<compile_context>
chip_gen: v7x
topology: tpu7x:2x2x1
jax: 0.10.0
libtpu: 0.0.40
codegen_flags: <defaults>
</compile_context>

<pallas_src>
import functools

import jax
import jax.numpy as jnp
from jax import lax
from jax.experimental import pallas as pl
from jax.experimental.pallas import tpu as pltpu


def _language_proj_kernel(x_ref, w1_ref, b1_ref, w2_ref, b2_ref, out_ref,
                          *, normalize, aggregate_words, compute_dtype):
    """One row tile: [word-mean] -> Linear(Din,H_pad) -> ReLU -> Linear(H_pad,E_pad)
    -> optional L2-normalize.  All padded columns are exactly zero."""
    if aggregate_words:
        # x_ref is (TN, W, P); mean over the (tiny, trace-time constant) word axis with
        # plain VPU adds -- fused in-kernel, no separate XLA mean pass over HBM.
        x3 = x_ref[...].astype(jnp.float32)
        x = x3[:, 0, :]
        for j in range(1, x3.shape[1]):
            x = x + x3[:, j, :]
        x = x * (1.0 / x3.shape[1])
    else:
        x = x_ref[...]                                     # (TN, Din) f32
    x = x.astype(compute_dtype)                            # bf16 MXU operands
    # Layer 1: bf16 MXU matmul, f32 accumulate, f32 bias + ReLU.
    h = jnp.dot(x, w1_ref[...], preferred_element_type=jnp.float32) + b1_ref[...]
    h = jnp.maximum(h, 0.0)
    # Layer 2: hidden and out-features are both lane-dense (zero-padded to x128).
    o = jnp.dot(h.astype(compute_dtype), w2_ref[...],
                preferred_element_type=jnp.float32) + b2_ref[...]
    if normalize:
        # F.normalize(p=2, dim=-1, eps=1e-12): x / max(||x||_2, 1e-12)
        # == x * rsqrt(max(sum(x^2), 1e-24)); rsqrt runs on the otherwise-idle EUP.
        sumsq = jnp.sum(o * o, axis=-1, keepdims=True)
        o = o * lax.rsqrt(jnp.maximum(sumsq, 1e-24))
    out_ref[...] = o.astype(out_ref.dtype)


def _round_up(x, m):
    return ((x + m - 1) // m) * m


def _pad_dim(d):
    """Lane-dense padding: multiple of 128; 256-align large dims (v6e/v7x 2x256 MXU)."""
    p = _round_up(d, 128)
    if p >= 1024:
        p = _round_up(d, 256)
    return p


def language_proj(batch_embeddings, w1, b1, w2, b2, *,
                  aggreg="concatenation", normalize=True, tile_n=512,
                  compute_dtype=jnp.bfloat16, out_dtype=jnp.float32):
    """batch_embeddings: [N, num_words, P] -> [N, embed_size]
    (LanguageProj forward, num_layers=2 / Proj_2Unit, dropout=False eval path).

    Tip: out_dtype=jnp.bfloat16 halves output HBM traffic (outputs are in [-1, 1]
    when normalize=True); default stays f32 to match the PyTorch reference."""
    N, W, P = batch_embeddings.shape
    fuse_average = aggreg == "average"
    if aggreg == "concatenation":
        feats = batch_embeddings.reshape(N, W * P)   # contiguous merge: free bitcast
    elif fuse_average:
        feats = batch_embeddings                     # word-mean is fused in-kernel
    else:
        raise ValueError(f"unknown aggreg {aggreg!r}")
    d_block = W * P                                  # activation elements staged per row

    Din, H = w1.shape
    E = w2.shape[1]
    assert Din == (P if fuse_average else W * P)
    assert w2.shape[0] == H and b1.shape[-1] == H and b2.shape[-1] == E

    # ---- zero-pad hidden & output features to lane-dense widths ----------------------
    H_pad, E_pad = _pad_dim(H), _pad_dim(E)
    w1p = w1
    b1p = b1.astype(jnp.float32)
    if H_pad != H:
        w1p = jnp.zeros((Din, H_pad), w1.dtype).at[:, :H].set(w1)
        b1p = jnp.zeros((H_pad,), jnp.float32).at[:H].set(b1p)
    w2p = w2
    b2p = b2.astype(jnp.float32)
    if H_pad != H or E_pad != E:
        w2p = jnp.zeros((H_pad, E_pad), w2.dtype).at[:H, :E].set(w2)
        b2p = jnp.zeros((E_pad,), jnp.float32).at[:E].set(b2p)
    w1p = w1p.astype(compute_dtype)
    w2p = w2p.astype(compute_dtype)
    b1p = b1p.reshape(1, H_pad)
    b2p = b2p.reshape(1, E_pad)

    # ---- generation-aware VMEM budget & 16-aligned row tile --------------------------
    out_b = jnp.dtype(out_dtype).itemsize
    try:
        vmem_cap = int(getattr(pltpu.get_tpu_info(), "vmem_capacity_bytes", 0)) or (64 << 20)
    except Exception:
        vmem_cap = 64 << 20                          # conservative (v7x-sized) fallback
    vmem_budget = int(0.70 * vmem_cap)

    def _vmem_est(t, weight_bufs):
        act = 2 * t * d_block * 4                            # double-buffered f32 input tiles
        outb = 2 * t * E_pad * out_b                         # double-buffered output tiles
        wgt = weight_bufs * ((Din * H_pad + H_pad * E_pad) * 2 + (H_pad + E_pad) * 4)
        inter = t * (2 * d_block + 6 * H_pad + 8 * E_pad)    # bf16 x, f32+bf16 h, f32 o (+norm)
        return act + outb + wgt + inter

    tile_n = max(16, (min(int(tile_n), _round_up(N, 16)) // 16) * 16)
    while tile_n > 16 and _vmem_est(tile_n, 2) > vmem_budget:
        tile_n = max(16, ((tile_n // 2) // 16) * 16)
    # TODO(synk): if resident weights alone blow the budget (huge one-hot Din), add a
    #             K-reduction grid axis over Din (P3 accumulator) instead of shrinking tile_n.

    est = _vmem_est(tile_n, 2)
    vmem_limit = None
    if est > (12 << 20):                             # above v5e's conservative default scope
        vmem_limit = int(min(est + (8 << 20), int(0.9 * vmem_cap)))

    kernel = functools.partial(_language_proj_kernel, normalize=normalize,
                               aggregate_words=fuse_average, compute_dtype=compute_dtype)

    if fuse_average:
        x_shape, x_index_map = (tile_n, W, P), (lambda i: (i, 0, 0))
    else:
        x_shape, x_index_map = (tile_n, Din), (lambda i: (i, 0))

    def _run(weight_bufs):
        # Resident weights/biases (constant index_map): single-buffer to free VMEM.
        wkw = {"pipeline_mode": pl.Buffered(1)} if weight_bufs == 1 else {}
        grid_spec = pltpu.PrefetchScalarGridSpec(
            num_scalar_prefetch=0,
            grid=(pl.cdiv(N, tile_n),),              # N not padded; last block is clipped
            in_specs=[
                pl.BlockSpec(x_shape, x_index_map),                    # activations (f32)
                pl.BlockSpec((Din, H_pad), lambda i: (0, 0), **wkw),   # w1 (resident)
                pl.BlockSpec((1, H_pad), lambda i: (0, 0), **wkw),     # b1
                pl.BlockSpec((H_pad, E_pad), lambda i: (0, 0), **wkw), # w2 (resident)
                pl.BlockSpec((1, E_pad), lambda i: (0, 0), **wkw),     # b2
            ],
            out_specs=pl.BlockSpec((tile_n, E_pad), lambda i: (i, 0)),
        )
        return pl.pallas_call(
            kernel,
            out_shape=jax.ShapeDtypeStruct((N, E_pad), out_dtype),
            grid_spec=grid_spec,
            compiler_params=pltpu.CompilerParams(
                # TODO(synk): on v7x consider pltpu.CORE_PARALLEL on this axis if plain
                #             "parallel" does not shard row tiles over both TensorCores.
                dimension_semantics=("parallel",),
                vmem_limit_bytes=vmem_limit,
            ),
        )(feats, w1p, b1p, w2p, b2p)

    try:
        out = _run(1)      # single-buffered resident weights (frees VMEM, esp. v7x)
    except Exception:      # pipeline_mode / Buffered(1) unsupported -> default buffering
        out = _run(2)

    # TODO(synk): return the E_pad-padded buffer directly if the consumer accepts it
    #             (skips one extra HBM pass for the column slice).
    return out[:, :E] if E_pad != E else out


def _reference(batch_embeddings, w1, b1, w2, b2, *, aggreg="concatenation", normalize=True):
    """Pure-JAX f32 reference matching the PyTorch forward (eval mode)."""
    if aggreg == "concatenation":
        x = batch_embeddings.reshape(batch_embeddings.shape[0], -1)
    else:
        x = jnp.mean(batch_embeddings, axis=1)
    h = jnp.maximum(x @ w1 + b1, 0.0)
    o = h @ w2 + b2
    if normalize:
        o = o / jnp.maximum(jnp.linalg.norm(o, axis=-1, keepdims=True), 1e-12)
    return o


if __name__ == "__main__":
    # Small shapes consistent with LanguageProj defaults (num_layers=2, normalize=True,
    # dropout=False). N=25 exercises the clipped partial last block; hidden=64 and
    # embed=96 exercise the H / E lane-padding paths; tile_n=16 gives a 2-step grid.
    N, num_words, input_dim = 25, 2, 48
    hidden, embed_size = 64, 96

    key = jax.random.PRNGKey(0)
    k_x, k_w1, k_b1, k_w2, k_b2, k_aw1, k_ab1, k_aw2, k_ab2 = jax.random.split(key, 9)

    x = jax.random.normal(k_x, (N, num_words, input_dim), dtype=jnp.float32)

    # PyTorch nn.Linear-style init: U(-1/sqrt(fan_in), 1/sqrt(fan_in)).
    D = num_words * input_dim
    lim1 = 1.0 / jnp.sqrt(float(D))
    lim2 = 1.0 / jnp.sqrt(float(hidden))
    w1 = jax.random.uniform(k_w1, (D, hidden), minval=-lim1, maxval=lim1, dtype=jnp.float32)
    b1 = jax.random.uniform(k_b1, (hidden,), minval=-lim1, maxval=lim1, dtype=jnp.float32)
    w2 = jax.random.uniform(k_w2, (hidden, embed_size), minval=-lim2, maxval=lim2, dtype=jnp.float32)
    b2 = jax.random.uniform(k_b2, (embed_size,), minval=-lim2, maxval=lim2, dtype=jnp.float32)

    # Default 'concatenation' aggregation + normalize (small tile -> multi-step grid).
    out = language_proj(x, w1, b1, w2, b2, aggreg="concatenation", normalize=True, tile_n=16)
    out = jax.block_until_ready(out)
    ref = _reference(x, w1, b1, w2, b2, aggreg="concatenation", normalize=True)
    assert out.shape == (N, embed_size)
    # bf16 MXU operands vs f32 reference -> loosened tolerance.
    assert jnp.allclose(out, ref, atol=2e-2, rtol=2e-2), "concatenation path mismatch"

    # Default tile size path (tile clamped to round_up(N,16), single grid step).
    out_big = jax.block_until_ready(
        language_proj(x, w1, b1, w2, b2, aggreg="concatenation", normalize=True))
    assert jnp.allclose(out_big, ref, atol=2e-2, rtol=2e-2), "default-tile path mismatch"

    # 'average' aggregation variant (word-mean fused in-kernel; weights sized for input_dim).
    lim1a = 1.0 / jnp.sqrt(float(input_dim))
    aw1 = jax.random.uniform(k_aw1, (input_dim, hidden), minval=-lim1a, maxval=lim1a, dtype=jnp.float32)
    ab1 = jax.random.uniform(k_ab1, (hidden,), minval=-lim1a, maxval=lim1a, dtype=jnp.float32)
    aw2 = jax.random.uniform(k_aw2, (hidden, embed_size), minval=-lim2, maxval=lim2, dtype=jnp.float32)
    ab2 = jax.random.uniform(k_ab2, (embed_size,), minval=-lim2, maxval=lim2, dtype=jnp.float32)

    out_a = language_proj(x, aw1, ab1, aw2, ab2, aggreg="average", normalize=True, tile_n=16)
    out_a = jax.block_until_ready(out_a)
    ref_a = _reference(x, aw1, ab1, aw2, ab2, aggreg="average", normalize=True)
    assert out_a.shape == (N, embed_size)
    assert jnp.allclose(out_a, ref_a, atol=2e-2, rtol=2e-2), "average path mismatch"

    print("KERNEL_OK")
</pallas_src>

<mosaic_0001>
module attributes {stable_mosaic.version = 11 : i64} {
  func.func @_language_proj_kernel(%arg0: i32, %arg1: memref<16x96xf32, #tpu.memory_space<vmem>>, %arg2: memref<96x128xbf16, #tpu.memory_space<vmem>>, %arg3: memref<1x128xf32, #tpu.memory_space<vmem>>, %arg4: memref<128x128xbf16, #tpu.memory_space<vmem>>, %arg5: memref<1x128xf32, #tpu.memory_space<vmem>>, %arg6: memref<16x128xf32, #tpu.memory_space<vmem>>) attributes {dimension_semantics = [#tpu.dimension_semantics<parallel>], iteration_bounds = array<i64: 2>, scalar_prefetch = 0 : i64, scratch_operands = 0 : i64, tpu.core_type = #tpu.core_type<tc>, window_params = [{transform_indices = @transform_0, window_bounds = array<i64: 16, 96>}, {pipeline_mode = #tpu.pipeline_mode<synchronous>, transform_indices = @transform_1, window_bounds = array<i64: 96, 128>}, {pipeline_mode = #tpu.pipeline_mode<synchronous>, transform_indices = @transform_2, window_bounds = array<i64: 1, 128>}, {pipeline_mode = #tpu.pipeline_mode<synchronous>, transform_indices = @transform_3, window_bounds = array<i64: 128, 128>}, {pipeline_mode = #tpu.pipeline_mode<synchronous>, transform_indices = @transform_4, window_bounds = array<i64: 1, 128>}, {transform_indices = @transform_5, window_bounds = array<i64: 16, 128>}]} {
    %c0 = arith.constant 0 : index
    %c0_0 = arith.constant 0 : index
    %0 = vector.load %arg1[%c0, %c0_0] : memref<16x96xf32, #tpu.memory_space<vmem>>, vector<16x96xf32>
    %1 = arith.truncf %0 : vector<16x96xf32> to vector<16x96xbf16>
    %c0_1 = arith.constant 0 : index
    %c0_2 = arith.constant 0 : index
    %2 = vector.load %arg2[%c0_1, %c0_2] : memref<96x128xbf16, #tpu.memory_space<vmem>>, vector<96x128xbf16>
    %cst = arith.constant dense<0.000000e+00> : vector<16x128xf32>
    %3 = tpu.matmul %1, %2, %cst {dimension_numbers = #tpu.dot_dimension_numbers<[1], [0], [0], [1], [0, 0, 1, 1], [], []>} : vector<16x96xbf16>, vector<96x128xbf16>, vector<16x128xf32> -> vector<16x128xf32>
    %c0_3 = arith.constant 0 : index
    %c0_4 = arith.constant 0 : index
    %4 = vector.load %arg3[%c0_3, %c0_4] : memref<1x128xf32, #tpu.memory_space<vmem>>, vector<1x128xf32>
    %5 = vector.broadcast %4 : vector<1x128xf32> to vector<16x128xf32>
    %6 = arith.addf %3, %5 : vector<16x128xf32>
    %cst_5 = arith.constant 0.000000e+00 : f32
    %7 = vector.broadcast %cst_5 : f32 to vector<16x128xf32>
    %8 = arith.maximumf %6, %7 : vector<16x128xf32>
    %9 = arith.truncf %8 : vector<16x128xf32> to vector<16x128xbf16>
    %c0_6 = arith.constant 0 : index
    %c0_7 = arith.constant 0 : index
    %10 = vector.load %arg4[%c0_6, %c0_7] : memref<128x128xbf16, #tpu.memory_space<vmem>>, vector<128x128xbf16>
    %cst_8 = arith.constant dense<0.000000e+00> : vector<16x128xf32>
    %11 = tpu.matmul %9, %10, %cst_8 {dimension_numbers = #tpu.dot_dimension_numbers<[1], [0], [0], [1], [0, 0, 1, 1], [], []>} : vector<16x128xbf16>, vector<128x128xbf16>, vector<16x128xf32> -> vector<16x128xf32>
    %c0_9 = arith.constant 0 : index
    %c0_10 = arith.constant 0 : index
    %12 = vector.load %arg5[%c0_9, %c0_10] : memref<1x128xf32, #tpu.memory_space<vmem>>, vector<1x128xf32>
    %13 = vector.broadcast %12 : vector<1x128xf32> to vector<16x128xf32>
    %14 = arith.addf %11, %13 : vector<16x128xf32>
    %15 = arith.mulf %14, %14 : vector<16x128xf32>
    %cst_11 = arith.constant dense<0.000000e+00> : vector<16xf32>
    %16 = vector.multi_reduction <add>, %15, %cst_11 [1] : vector<16x128xf32> to vector<16xf32>
    %17 = vector.shape_cast %16 : vector<16xf32> to vector<16x1xf32>
    %cst_12 = arith.constant 1.000000e-24 : f32
    %18 = vector.broadcast %cst_12 : f32 to vector<16x1xf32>
    %19 = arith.maximumf %17, %18 : vector<16x1xf32>
    %20 = math.rsqrt %19 : vector<16x1xf32>
    %21 = vector.broadcast %20 : vector<16x1xf32> to vector<16x128xf32>
    %22 = arith.mulf %14, %21 : vector<16x128xf32>
    %c0_13 = arith.constant 0 : index
    %c0_14 = arith.constant 0 : index
    %23 = vector.load %arg6[%c0_13, %c0_14] : memref<16x128xf32, #tpu.memory_space<vmem>>, vector<16x128xf32>
    tpu.vector_store %arg6[%c0_13, %c0_14], %22 {strides = array<i32>} : memref<16x128xf32, #tpu.memory_space<vmem>>, vector<16x128xf32>,
    return
  }
  func.func @transform_0(%arg0: i32) -> (i32, i32) {
    %c0_i32 = arith.constant 0 : i32
    %c0_i32_0 = arith.constant 0 : i32
    return %arg0, %c0_i32 : i32, i32
  }
  func.func @transform_1(%arg0: i32) -> (i32, i32) {
    %c0_i32 = arith.constant 0 : i32
    %c0_i32_0 = arith.constant 0 : i32
    %c0_i32_1 = arith.constant 0 : i32
    return %c0_i32, %c0_i32_0 : i32, i32
  }
  func.func @transform_2(%arg0: i32) -> (i32, i32) {
    %c0_i32 = arith.constant 0 : i32
    %c0_i32_0 = arith.constant 0 : i32
    %c0_i32_1 = arith.constant 0 : i32
    return %c0_i32, %c0_i32_0 : i32, i32
  }
  func.func @transform_3(%arg0: i32) -> (i32, i32) {
    %c0_i32 = arith.constant 0 : i32
    %c0_i32_0 = arith.constant 0 : i32
    %c0_i32_1 = arith.constant 0 : i32
    return %c0_i32, %c0_i32_0 : i32, i32
  }
  func.func @transform_4(%arg0: i32) -> (i32, i32) {
    %c0_i32 = arith.constant 0 : i32
    %c0_i32_0 = arith.constant 0 : i32
    %c0_i32_1 = arith.constant 0 : i32
    return %c0_i32, %c0_i32_0 : i32, i32
  }
  func.func @transform_5(%arg0: i32) -> (i32, i32) {
    %c0_i32 = arith.constant 0 : i32
    %c0_i32_0 = arith.constant 0 : i32
    return %arg0, %c0_i32 : i32, i32
  }
}

module attributes {stable_mosaic.version = 11 : i64} {
  func.func @_language_proj_kernel(%arg0: i32, %arg1: memref<16x96xf32, #tpu.memory_space<vmem>>, %arg2: memref<96x128xbf16, #tpu.memory_space<vmem>>, %arg3: memref<1x128xf32, #tpu.memory_space<vmem>>, %arg4: memref<128x128xbf16, #tpu.memory_space<vmem>>, %arg5: memref<1x128xf32, #tpu.memory_space<vmem>>, %arg6: memref<16x128xf32, #tpu.memory_space<vmem>>) attributes {dimension_semantics = [#tpu.dimension_semantics<parallel>], iteration_bounds = array<i64: 2>, scalar_prefetch = 0 : i64, scratch_operands = 0 : i64, tpu.core_type = #tpu.core_type<tc>, window_params = [{transform_indices = @transform_0, window_bounds = array<i64: 16, 96>}, {pipeline_mode = #tpu.pipeline_mode<synchronous>, transform_indices = @transform_1, window_bounds = array<i64: 96, 128>}, {pipeline_mode = #tpu.pipeline_mode<synchronous>, transform_indices = @transform_2, window_bounds = array<i64: 1, 128>}, {pipeline_mode = #tpu.pipeline_mode<synchronous>, transform_indices = @transform_3, window_bounds = array<i64: 128, 128>}, {pipeline_mode = #tpu.pipeline_mode<synchronous>, transform_indices = @transform_4, window_bounds = array<i64: 1, 128>}, {transform_indices = @transform_5, window_bounds = array<i64: 16, 128>}]} {
    %c0 = arith.constant 0 : index
    %c0_0 = arith.constant 0 : index
    %0 = vector.load %arg1[%c0, %c0_0] : memref<16x96xf32, #tpu.memory_space<vmem>>, vector<16x96xf32>
    %1 = arith.truncf %0 : vector<16x96xf32> to vector<16x96xbf16>
    %c0_1 = arith.constant 0 : index
    %c0_2 = arith.constant 0 : index
    %2 = vector.load %arg2[%c0_1, %c0_2] : memref<96x128xbf16, #tpu.memory_space<vmem>>, vector<96x128xbf16>
    %cst = arith.constant dense<0.000000e+00> : vector<16x128xf32>
    %3 = tpu.matmul %1, %2, %cst {dimension_numbers = #tpu.dot_dimension_numbers<[1], [0], [0], [1], [0, 0, 1, 1], [], []>} : vector<16x96xbf16>, vector<96x128xbf16>, vector<16x128xf32> -> vector<16x128xf32>
    %c0_3 = arith.constant 0 : index
    %c0_4 = arith.constant 0 : index
    %4 = vector.load %arg3[%c0_3, %c0_4] : memref<1x128xf32, #tpu.memory_space<vmem>>, vector<1x128xf32>
    %5 = vector.broadcast %4 : vector<1x128xf32> to vector<16x128xf32>
    %6 = arith.addf %3, %5 : vector<16x128xf32>
    %cst_5 = arith.constant 0.000000e+00 : f32
    %7 = vector.broadcast %cst_5 : f32 to vector<16x128xf32>
    %8 = arith.maximumf %6, %7 : vector<16x128xf32>
    %9 = arith.truncf %8 : vector<16x128xf32> to vector<16x128xbf16>
    %c0_6 = arith.constant 0 : index
    %c0_7 = arith.constant 0 : index
    %10 = vector.load %arg4[%c0_6, %c0_7] : memref<128x128xbf16, #tpu.memory_space<vmem>>, vector<128x128xbf16>
    %cst_8 = arith.constant dense<0.000000e+00> : vector<16x128xf32>
    %11 = tpu.matmul %9, %10, %cst_8 {dimension_numbers = #tpu.dot_dimension_numbers<[1], [0], [0], [1], [0, 0, 1, 1], [], []>} : vector<16x128xbf16>, vector<128x128xbf16>, vector<16x128xf32> -> vector<16x128xf32>
    %c0_9 = arith.constant 0 : index
    %c0_10 = arith.constant 0 : index
    %12 = vector.load %arg5[%c0_9, %c0_10] : memref<1x128xf32, #tpu.memory_space<vmem>>, vector<1x128xf32>
    %13 = vector.broadcast %12 : vector<1x128xf32> to vector<16x128xf32>
    %14 = arith.addf %11, %13 : vector<16x128xf32>
    %15 = arith.mulf %14, %14 : vector<16x128xf32>
    %cst_11 = arith.constant dense<0.000000e+00> : vector<16xf32>
    %16 = vector.multi_reduction <add>, %15, %cst_11 [1] : vector<16x128xf32> to vector<16xf32>
    %17 = vector.shape_cast %16 : vector<16xf32> to vector<16x1xf32>
    %cst_12 = arith.constant 1.000000e-24 : f32
    %18 = vector.broadcast %cst_12 : f32 to vector<16x1xf32>
    %19 = arith.maximumf %17, %18 : vector<16x1xf32>
    %20 = math.rsqrt %19 : vector<16x1xf32>
    %21 = vector.broadcast %20 : vector<16x1xf32> to vector<16x128xf32>
    %22 = arith.mulf %14, %21 : vector<16x128xf32>
    %c0_13 = arith.constant 0 : index
    %c0_14 = arith.constant 0 : index
    %23 = vector.load %arg6[%c0_13, %c0_14] : memref<16x128xf32, #tpu.memory_space<vmem>>, vector<16x128xf32>
    tpu.vector_store %arg6[%c0_13, %c0_14], %22 {strides = array<i32>} : memref<16x128xf32, #tpu.memory_space<vmem>>, vector<16x128xf32>,
    return
  }
  func.func @transform_0(%arg0: i32) -> (i32, i32) {
    %c0_i32 = arith.constant 0 : i32
    %c0_i32_0 = arith.constant 0 : i32
    return %arg0, %c0_i32 : i32, i32
  }
  func.func @transform_1(%arg0: i32) -> (i32, i32) {
    %c0_i32 = arith.constant 0 : i32
    %c0_i32_0 = arith.constant 0 : i32
    %c0_i32_1 = arith.constant 0 : i32
    return %c0_i32, %c0_i32_0 : i32, i32
  }
  func.func @transform_2(%arg0: i32) -> (i32, i32) {
    %c0_i32 = arith.constant 0 : i32
    %c0_i32_0 = arith.constant 0 : i32
    %c0_i32_1 = arith.constant 0 : i32
    return %c0_i32, %c0_i32_0 : i32, i32
  }
  func.func @transform_3(%arg0: i32) -> (i32, i32) {
    %c0_i32 = arith.constant 0 : i32
    %c0_i32_0 = arith.constant 0 : i32
    %c0_i32_1 = arith.constant 0 : i32
    return %c0_i32, %c0_i32_0 : i32, i32
  }
  func.func @transform_4(%arg0: i32) -> (i32, i32) {
    %c0_i32 = arith.constant 0 : i32
    %c0_i32_0 = arith.constant 0 : i32
    %c0_i32_1 = arith.constant 0 : i32
    return %c0_i32, %c0_i32_0 : i32, i32
  }
  func.func @transform_5(%arg0: i32) -> (i32, i32) {
    %c0_i32 = arith.constant 0 : i32
    %c0_i32_0 = arith.constant 0 : i32
    return %arg0, %c0_i32 : i32, i32
  }
}

</mosaic_0001>

<bundles_post_ra>
// kernel: tpu_custom_call.1
= control target key start
LH: loop header
LB: loop body
LE: loop exit
PB: predicated region body
PF: predicated region fallthrough
CT: control target
= control target key end

     0   :  { %10 = vsyncpa [#allocation3], 0  ;;  %s1243_s0 = inlined_call_operand.hbm [shape: f32[25,96], index: 0, kind: input, shape index: {}]   ;;  %s1244_s1 = inlined_call_operand.hbm [shape: bf16[96,128], index: 1, kind: input, shape index: {}]   ;;  %s1245_s2 = inlined_call_operand.vmem [shape: f32[1,128], index: 2, kind: input, shape index: {}]   ;;  %s1246_s3 = inlined_call_operand.hbm [shape: bf16[128,128], index: 3, kind: input, shape index: {}]   ;;  %s1247_s4 = inlined_call_operand.vmem [shape: f32[1,128], index: 4, kind: input, shape index: {}]   ;;  %s1248_s5 = inlined_call_operand.hbm [shape: f32[25,128], index: 5, kind: output, shape index: {}]  }
   0x1   :  { %12 = vsyncpa [#allocation3 + $0x1], 0 }
   0x2   :  { %13 = vsyncpa [#allocation6], 0 }
   0x3   :  { %14 = vsyncpa [#allocation4], 0 }
   0x4   :  { %16 = vsyncpa [#allocation4 + $0x1], 0  ;;  %s995_s18 = smov 0   ;;  %s997_s19 = smov 0  }
   0x5   :  { %s999_s20 = smov 0   ;;  %s1001_s21 = smov 0  }
   0x6 LB: > { %s1016_s22 = sadd.s32 4294967295, %s951_s21   ;;  %s613_s23 = sadd.s32 4294967294, %s951_s21   ;;  %s951_s21 = sphi %s1001_s21, %s1268_s21   ;;  %s947_s20 = sphi %s999_s20, %s1267_s20   ;;  %s943_s19 = sphi %s997_s19, %s1266_s19   ;;  %s939_s18 = sphi %s995_s18, %s1265_s18  }
   0x7   : > { %p42_p0 = scmp.ne.s32.totalorder %s943_s19, %s939_s18  ;;  %p1249_p1 = scmp.eq.s32.totalorder %s1016_s22, 0 }
   0x8   : > { %p156_p3 = scmp.eq.s32.totalorder %s613_s23, 1  ;;  %p614_p5 = scmp.ge.s32.totalorder %s951_s21, 1 }
   0x9   : > { %p1025_p4 = por %p1249_p1, %p42_p0  ;;  %p163_p7 = scmp.lt.s32.totalorder %s951_s21, 3 }
   0xa   : > { %p1030_p6 = por %p156_p3, %p42_p0  ;;  %s953_s27 = smov [#allocation5]  }
   0xb   : > { %s1252_s24 = scalar_select %p1025_p4, 1, 0 }
   0xc   : > { %s1253_s25 = scalar_select %p1030_p6, 1, 0 }
   0xd   : > { %p1035_p8 = pnand %p614_p5, %p163_p7  ;;  %s175_s28 = sshll.u32 %s953_s27, 4  ;;  %s1039_s28 = int_to_ptr.vmem [resolvable:$true] %s175_s28 }
   0xe   : > { %s954_s30 = smov [#allocation7]   ;;  %s795_s9 = scalar_lea.hbm %s1244_s1, 768 }
   0xf   : > { %p714_p9 = pneg %p1035_p8  ;;  %s191_s6 = sshll.u32 %s954_s30, 4  ;;  %s1050_s6 = int_to_ptr.vmem [resolvable:$true] %s191_s6 }
  0x10   : > { %p796_p12 = scmp.ne.s32.totalorder %s1244_s1, %s795_s9  ;;  %p802_p5 = scmp.lt.u32.totalorder %s795_s9, %s1244_s1 }
  0x11   : > { %p1046_p11 = pnand %p714_p9, %p1249_p1 }
  0x13   : > { %p797_p13 = pneg %p1046_p11 }
  0x15   : > { %p798_p0 = pnand %p797_p13, %p796_p12 }
  0x17   : > { %p799_p3 = pneg %p798_p0 }
  0x19   : > { %p804_p7 = pnand %p802_p5, %p799_p3 }
  0x1b   : > { %807 = shalt.err (!%p804_p7)
}
  0x1c   : > { %s808_s14 = scalar_lea.vmem %s1039_s28, 768  ;;  %p816_p2 = scmp.lt.s32.totalorder %s1039_s28, %s1039_s28 }
  0x1d   : > { %p809_p9 = scmp.ne.s32.totalorder %s1039_s28, %s808_s14  ;;  %p817_p12 = scmp.lt.s32.totalorder %s808_s14, %s808_s14 }
  0x1f   : > { %p811_p10 = pnand %p809_p9, %p797_p13  ;;  %p818_p0 = por %p817_p12, %p816_p2 }
  0x21   : > { %p812_p1 = pneg %p811_p10 }
  0x23   : > { %p819_p6 = pnand %p818_p0, %p812_p1 }
  0x25   : > { %822 = shalt.err (!%p819_p6)
}
  0x26   : > { %s955_s15 = smov 64   ;;  %s956_s16 = smov 4  }
  0x27   : > { %717 = dma.hbm_to_vmem [thread:$0]  (!%p1046_p11), %s1244_s1, 768, %s1039_s28, [#allocation6], %s955_s15, %s955_s15, %s956_s16  }
  0x28   : > { %s823_s7 = scalar_lea.hbm %s1246_s3, 1024 }
  0x29   : > { %p824_p2 = scmp.ne.s32.totalorder %s1246_s3, %s823_s7  ;;  %p830_p10 = scmp.lt.u32.totalorder %s823_s7, %s1246_s3 }
  0x2b   : > { %p826_p1 = pnand %p824_p2, %p797_p13 }
  0x2d   : > { %p827_p6 = pneg %p826_p1 }
  0x2f   : > { %p832_p3 = pnand %p830_p10, %p827_p6 }
  0x31   : > { %835 = shalt.err (!%p832_p3)
}
  0x32   : > { %s836_s28 = scalar_lea.vmem %s1050_s6, 1024  ;;  %p844_p12 = scmp.lt.s32.totalorder %s1050_s6, %s1050_s6 }
  0x33   : > { %p837_p5 = scmp.ne.s32.totalorder %s1050_s6, %s836_s28  ;;  %p845_p0 = scmp.lt.s32.totalorder %s836_s28, %s836_s28 }
  0x35   : > { %p839_p7 = pnand %p837_p5, %p797_p13  ;;  %p846_p2 = por %p845_p0, %p844_p12 }
  0x37   : > { %p840_p9 = pneg %p839_p7 }
  0x39   : > { %p847_p1 = pnand %p846_p2, %p840_p9 }
  0x3b   : > { %850 = shalt.err (!%p847_p1)
}
  0x3c   : > { %720 = dma.hbm_to_vmem [thread:$0]  (!%p1046_p11), %s1246_s3, 1024, %s1050_s6, [#allocation6], %s955_s15, %s955_s15, %s956_s16  }
  0x3d   : > { %s1105_s14 = sadd.s32 1, %s951_s21   ;;  %s29_s29 = sadd.s32 1, %s947_s20 }
  0x3e   : > { %s26_s17 = ssub.s32 %s951_s21, %s1105_s14  ;;  %p36_p13 = scmp.ne.s32.totalorder %s947_s20, %s943_s19 }
  0x3f   : > { %p27_p6 = scmp.eq.s32.totalorder %s26_s17, 0  ;;  %p37_p10 = scmp.eq.s32.totalorder %s951_s21, 0 }
  0x40   : > { %p1256_p3 = scmp.eq.s32.totalorder %s1016_s22, 1  ;;  %p731_p7 = scmp.lt.s32.totalorder %s951_s21, 2 }
  0x41   : > { %s1121_s27 = scalar_select %p27_p6, %s947_s20, %s29_s29  }
  0x42   : > { %p1115_p5 = por %p1256_p3, %p36_p13  ;;  %p38_p9 = por %p37_p10, %p36_p13 }
  0x43   : > { %s208_s30 = sand.u32 1, %s947_s20   ;;  %s648_s6 = sshll.u32 %s951_s21, 8 }
  0x44   : > { %s1257_s23 = scalar_select %p1115_p5, 1, 0 }
  0x45   : > { %s618_s7 = sshll.u32 %s208_s30, 4  ;;  %s1128_s8 = scalar_lea.hbm %s1243_s0, %s648_s6 }
  0x46   : > { %s212_s9 = scalar_lea.vmem [#allocation2], %s618_s7  ;;  %p1132_p11 = pnand %p731_p7, %p38_p9 }
  0x47   : > { %s219_s10 = sshll.u32 %s212_s9, 4  ;;  %s1136_s28 = scalar_lea.sflag [#allocation3], %s208_s30  ;;  %s1130_s10 = int_to_ptr.vmem [resolvable:$true] %s219_s10 }
  0x48   : > { %s851_s12 = scalar_lea.hbm %s1128_s8, 256  ;;  %p853_p0 = pneg %p1132_p11 }
  0x49   : > { %p852_p12 = scmp.ne.s32.totalorder %s1128_s8, %s851_s12  ;;  %s856_s17 = scalar_lea.hbm %s1243_s0, 512 }
  0x4a   : > { %p857_p13 = scmp.lt.u32.totalorder %s1128_s8, %s1243_s0  ;;  %p858_p6 = scmp.lt.u32.totalorder %s856_s17, %s851_s12 }
  0x4b   : > { %p854_p2 = pnand %p853_p0, %p852_p12  ;;  %p860_p3 = scmp.lt.u32.totalorder %s851_s12, %s1128_s8 }
  0x4c   : > { %p859_p10 = por %p858_p6, %p857_p13 }
  0x4d   : > { %p855_p1 = pneg %p854_p2 }
  0x4e   : > { %p861_p7 = por %p860_p3, %p859_p10 }
  0x50   : > { %p862_p9 = pnand %p861_p7, %p855_p1 }
  0x52   : > { %865 = shalt.err (!%p862_p9)
}
  0x53   : > { %s866_s30 = scalar_lea.vmem %s1130_s10, 256  ;;  %s957_s15 = smov [#allocation2]  }
  0x54   : > { %p867_p12 = scmp.ne.s32.totalorder %s1130_s10, %s866_s30  ;;  %s871_s16 = sshll.u32 %s957_s15, 4  ;;  %s872_s16 = int_to_ptr.vmem [resolvable:$false] %s871_s16 }
  0x55   : > { %s873_s9 = scalar_lea.vmem %s872_s16, 512  ;;  %p874_p4 = scmp.lt.s32.totalorder %s1130_s10, %s872_s16 }
  0x56   : > { %p869_p2 = pnand %p867_p12, %p853_p0  ;;  %p875_p13 = scmp.lt.s32.totalorder %s873_s9, %s866_s30 }
  0x58   : > { %p870_p5 = pneg %p869_p2  ;;  %p876_p6 = por %p875_p13, %p874_p4 }
  0x5a   : > { %p877_p10 = pnand %p876_p6, %p870_p5 }
  0x5c   : > { %880 = shalt.err (!%p877_p10)
}
  0x5d   : > { %s958_s12 = smov 128   ;;  %s959_s13 = smov 8  }
  0x5e   : > { %724 = dma.hbm_to_vmem [thread:$0]  (!%p1132_p11), %s1128_s8, 256, %s1130_s10, %s1136_s28, %s958_s12, %s958_s12, %s959_s13  }
  0x5f   : > { %231 = sbr.rel (%p1035_p8) target bundleno = 744 (0x2e8), region = 40  ;;  %s1167_s29 = sand.u32 (!%p1035_p8), 1, %s943_s19  }
  0x60   : > { %s622_s17 = sshll.u32 (!%p1035_p8), %s1167_s29, 4  ;;  %s234_s7 = scalar_lea.sflag (!%p1035_p8), [#allocation3], %s1167_s29 }
  0x61   : > { %s1173_s6 = scalar_lea.vmem (!%p1035_p8), [#allocation2], %s622_s17  ;;  %p1259_p4 = scmp.ne.s32.totalorder (!%p1035_p8), %s1252_s24, 0 }
  0x66   : > { %926 = dma.done.wait (%p1259_p4), %s234_s7, 256  }
  0x67   : > { %928 = vsyncadd (%p1259_p4), %s234_s7, 4294967040  ;;  %p1260_p5 = scmp.eq.s32.totalorder %s1016_s22, 0 }
  0x69   : > { %930 = dma.done.wait (%p1260_p5), [#allocation6], 1792   ;;  %p1261_p8 = pmov %p1260_p5 }
  0x6a   : > { %v960_v0 = vmov 0.0   ;;  %vm961_vm0 = vmmov 0   ;;  %v777_v1 = vld [vmem:[#allocation5] sm:$0xff]   ;;  %v778_v2 = vld [vmem:[#allocation5 + $0x8] sm:$0xff]   ;;  %v779_v3 = vld [vmem:[#allocation5 + $0x10] sm:$0xff]   ;;  %vm333_vm1 = vcmask 785408  }
  0x6b   : > { %932 = vsyncadd (%p1261_p8), [#allocation6], 4294965504  ;;  %666 = vmatprep.subr.bf16.mxu0 %v960_v0  ;;  %678 = vmatprep.mubr.msk.bf16.mxu0 %vm961_vm0, %v960_v0  ;;  %v783_v4 = vld [vmem:[#allocation7] sm:$0xff]   ;;  %v784_v5 = vld [vmem:[#allocation7 + $0x8] sm:$0xff]   ;;  %s649_s11 = sshll.u32 %s1016_s22, 8  ;;  %s271_s28 = scalar_lea.vmem [#allocation8], %s622_s17 }
  0x6c   : > { %682 = vmatprep.subr.bf16.mxu1 %v960_v0  ;;  %698 = vmatprep.mubr.msk.bf16.mxu1 %vm961_vm0, %v960_v0  ;;  %v780_v6 = vld [vmem:[#allocation5 + $0x18] sm:$0xff]   ;;  %v785_v7 = vld [vmem:[#allocation7 + $0x10] sm:$0xff]   ;;  %v786_v9 = vld [vmem:[#allocation7 + $0x18] sm:$0xff]   ;;  %s521_s30 = sshll.u32 %s271_s28, 4  ;;  %s1197_s9 = scalar_lea.hbm %s1248_s5, %s649_s11  ;;  %s1199_s30 = int_to_ptr.vmem [resolvable:$true] %s521_s30 }
  0x6d   : > { %667 = vmatpush3.bf16.msra.mxu0 %v777_v1  ;;  %683 = vmatpush3.bf16.msra.mxu1 %v783_v4  ;;  %v781_v8 = vld [vmem:[#allocation5 + $0x20] sm:$0xff]   ;;  %v782_v10 = vld [vmem:[#allocation5 + $0x28] sm:$0xff]   ;;  %v787_v14 = vld [vmem:[#allocation7 + $0x20] sm:$0xff]   ;;  %s508_s12 = scalar_lea.sflag [#allocation4], %s1167_s29  ;;  %s881_s13 = scalar_lea.vmem %s1199_s30, 256 }
  0x6e   : > { %668 = vmatprep.subr.bf16.mxu0 %v960_v0  ;;  %684 = vmatprep.subr.bf16.mxu1 %v960_v0  ;;  %v275_v11 = vld [vmem:[%s1173_s6] sm:$0xff]  ;;  %v276_v12 = vld [vmem:[%s1173_s6 + $0x8] sm:$0xff]  ;;  %p882_p11 = scmp.ne.s32.totalorder %s1199_s30, %s881_s13  ;;  %p1262_p0 = scmp.ne.s32.totalorder %s1257_s23, 0 }
  0x6f   : > { %v277_v13 = vpack.c.bf16 %v276_v12, %v275_v11  ;;  %v788_v15 = vld [vmem:[#allocation7 + $0x28] sm:$0xff]   ;;  %v789_v16 = vld [vmem:[#allocation7 + $0x30] sm:$0xff]   ;;  %v790_v17 = vld [vmem:[#allocation7 + $0x38] sm:$0xff]   ;;  %s962_s22 = smov [#allocation8]  }
  0x70   : > { %v626_v18 = vld [vmem:[%s1245_s2] ss:$0 sm:$0xff]  ;;  %p883_p1 = pnand %p882_p11, %p1262_p0  ;;  %s885_s17 = sshll.u32 %s962_s22, 4  ;;  %s886_s17 = int_to_ptr.vmem [resolvable:$false] %s885_s17 }
  0x71   : > { %669 = vmatpush3.bf16.msra.mxu0 %v778_v2  ;;  %685 = vmatpush3.bf16.msra.mxu1 %v784_v5  ;;  %v634_v28 = vld [vmem:[%s1247_s4] ss:$0 sm:$0xff]  ;;  %s887_s7 = scalar_lea.vmem %s886_s17, 512  ;;  %p888_p7 = scmp.lt.s32.totalorder %s1199_s30, %s886_s17 }
  0x72   : > { %670 = vmatprep.subr.bf16.mxu0 %v960_v0  ;;  %686 = vmatprep.subr.bf16.mxu1 %v960_v0  ;;  %p884_p3 = pneg %p883_p1  ;;  %p889_p9 = scmp.lt.s32.totalorder %s887_s7, %s881_s13 }
  0x74   : > { %p890_p12 = por %p889_p9, %p888_p7 }
  0x75   : > { %671 = vmatpush3.bf16.msra.mxu0 %v779_v3  ;;  %687 = vmatpush3.bf16.msra.mxu1 %v785_v7 }
  0x76   : > { %672 = vmatprep.subr.bf16.mxu0 %v960_v0  ;;  %688 = vmatprep.subr.bf16.mxu1 %v960_v0  ;;  %p891_p2 = pnand %p890_p12, %p884_p3 }
  0x79   : > { %673 = vmatpush3.bf16.msra.mxu0 %v780_v6  ;;  %689 = vmatpush3.bf16.msra.mxu1 %v786_v9 }
  0x7a   : > { %674 = vmatprep.subr.bf16.mxu0 %v960_v0  ;;  %690 = vmatprep.subr.bf16.mxu1 %v960_v0 }
  0x7d   : > { %675 = vmatpush3.bf16.msra.mxu0 %v781_v8  ;;  %691 = vmatpush3.bf16.msra.mxu1 %v787_v14 }
  0x7e   : > { %676 = vmatprep.subr.bf16.mxu0 %v960_v0  ;;  %692 = vmatprep.subr.bf16.mxu1 %v960_v0 }
  0x81   : > { %677 = vmatpush3.bf16.msra.mxu0 %v782_v10  ;;  %693 = vmatpush3.bf16.msra.mxu1 %v788_v15 }
  0x82   : > { %694 = vmatprep.subr.bf16.mxu1 %v960_v0 }
  0x84   : > { %679 = vmatmul.mubr.msk.bf16.vlgmr.msra.gmra.mrb[0].mxu0 %vm333_vm1, %v277_v13 }
  0x85   : > { %695 = vmatpush3.bf16.msra.mxu1 %v789_v16 }
  0x86   : > { %696 = vmatprep.subr.bf16.mxu1 %v960_v0 }
  0x89   : > { %697 = vmatpush3.bf16.msra.mxu1 %v790_v17 }
 0x157   : > { %v371_v19 = vpop.f32.mrb[0].mxu0 }
 0x158   : > { %v372_v20 = vadd.f32 %v626_v18, %v371_v19  ;;  %v680_v21 = vpop.f32.mrb[1].mxu0 }
 0x159   : > { %v374_v22 = vpop.f32.mrb[2].mxu0 }
 0x15a   : > { %v375_v23 = vadd.f32 %v626_v18, %v374_v22  ;;  %v681_v24 = vpop.f32.mrb[3].mxu0  ;;  %v378_v25 = vmax.f32 %v372_v20, 0.0 }
 0x15c   : > { %v379_v26 = vmax.f32 %v375_v23, 0.0 }
 0x15e   : > { %v380_v27 = vpack.c.bf16 %v379_v26, %v378_v25 }
 0x160   : > { %699 = vmatmul.mubr.bf16.vlgmr.msra.gmra.mrb[0].mxu1 %v380_v27 }
 0x233   : > { %v486_v29 = vpop.f32.mrb[0].mxu1 }
 0x234   : > { %v487_v30 = vadd.f32 %v634_v28, %v486_v29  ;;  %v700_v31 = vpop.f32.mrb[1].mxu1 }
 0x235   : > { %v489_v32 = vpop.f32.mrb[2].mxu1 }
 0x236   : > { %v490_v33 = vadd.f32 %v634_v28, %v489_v32  ;;  %v701_v34 = vpop.f32.mrb[3].mxu1  ;;  %v493_v35 = vmul.f32 %v487_v30, %v487_v30 }
 0x238   : > { %495 = vadd.xlane.f32.xlu0 %v493_v35  ;;  %v494_v36 = vmul.f32 %v490_v33, %v490_v33 }
 0x23c   : > { %497 = vadd.xlane.f32.xlu0 %v494_v36 }
 0x2c5   : > { %v496_v37 = vpop.xlane.xlu0 %495 }
 0x2c6   : > { %v499_v38 = vmax.f32 %v496_v37, 1e-24 }
 0x2c8   : > { %791 = vrsqrt.f32 %v499_v38 }
 0x2c9   : > { %v498_v39 = vpop.xlane.xlu0 %497 }
 0x2ca   : > { %v500_v40 = vmax.f32 %v498_v39, 1e-24 }
 0x2cc   : > { %793 = vrsqrt.f32 %v500_v40 }
 0x2d2   : > { %v792_v41 = vpop.eup %791 }
 0x2d3   : > { %v503_v42 = vmul.f32 %v792_v41, %v487_v30 }
 0x2d5   : > { %505 = vst [vmem:[%s271_s28] sm:$0xff] %v503_v42 }
 0x2d6   : > { %v794_v43 = vpop.eup %793 }
 0x2d7   : > { %v504_v44 = vmul.f32 %v794_v43, %v490_v33 }
 0x2d9   : > { %506 = vst [vmem:[%s271_s28 + $0x8] sm:$0xff] %v504_v44 }
 0x2da   : > { %894 = shalt.err (!%p891_p2)
}
 0x2db   : > { %s895_s6 = scalar_lea.hbm %s1197_s9, 256  ;;  %s899_s8 = scalar_lea.hbm %s1248_s5, 512 }
 0x2dc   : > { %p896_p13 = scmp.ne.s32.totalorder %s1197_s9, %s895_s6  ;;  %p900_p4 = scmp.lt.u32.totalorder %s1197_s9, %s1248_s5 }
 0x2dd   : > { %p901_p5 = scmp.lt.u32.totalorder %s899_s8, %s895_s6  ;;  %p903_p11 = scmp.lt.u32.totalorder %s895_s6, %s1197_s9 }
 0x2de   : > { %p897_p6 = pnand %p896_p13, %p1262_p0 }
 0x2df   : > { %p902_p8 = por %p901_p5, %p900_p4 }
 0x2e0   : > { %p898_p10 = pneg %p897_p6 }
 0x2e1   : > { %p904_p1 = por %p903_p11, %p902_p8 }
 0x2e3   : > { %p905_p3 = pnand %p904_p1, %p898_p10 }
 0x2e5   : > { %908 = shalt.err (!%p905_p3)
}
 0x2e6   : > { %s963_s28 = smov 128   ;;  %s964_s15 = smov 8  }
 0x2e7   : > { %712 = dma.vmem_to_hbm [thread:$0]  (%p1262_p0), %s1199_s30, 256, %s1197_s9, %s508_s12, %s963_s28, %s963_s28, %s964_s15  }
 0x2e8 PF: > { %s536_s16 = sand.u32 1, %s939_s18   ;;  %p1263_p7 = scmp.ne.s32.totalorder %s1253_s25, 0 }
 0x2e9   : > { %p1264_p9 = scmp.ge.s32.totalorder %s951_s21, 2  ;;  %s537_s13 = scalar_lea.sflag [#allocation4], %s536_s16 }
 0x2eb   : > { %p726_p12 = pnand %p1264_p9, %p1263_p7 }
 0x2ed   : > { %934 = dma.done.wait (!%p726_p12), %s537_s13, 256  }
 0x2ee   : > { %936 = vsyncadd (!%p726_p12), %s537_s13, 4294967040  ;;  %p19_p2 = scmp.ge.s32.totalorder %s1105_s14, 4   ;;  %s1265_s18 = smov %s943_s19 }
 0x2ef   : > { %s1266_s19 = smov %s947_s20  ;;  %s1267_s20 = smov %s1121_s27 }
 0x2f0   : > { %s1268_s21 = smov %s1105_s14  ;;  %21 = sbr.rel (!%p19_p2) target bundleno = 6 (0x6), region = 93 }
 0x2f7   :  { %542 = vsyncpa [#allocation3], 1 }
 0x2f8   :  { %544 = vsyncpa [#allocation3 + $0x1], 1 }
 0x2f9   :  { %545 = vsyncpa [#allocation6], 1 }
 0x2fa   :  { %546 = vsyncpa [#allocation4], 1 }
 0x2fb   :  { %548 = vsyncpa [#allocation4 + $0x1], 1 }

// kernel: tpu_custom_call.1
= control target key start
LH: loop header
LB: loop body
LE: loop exit
PB: predicated region body
PF: predicated region fallthrough
CT: control target
= control target key end

     0   :  { %10 = vsyncpa [#allocation3], 0  ;;  %s1243_s0 = inlined_call_operand.hbm [shape: f32[25,96], index: 0, kind: input, shape index: {}]   ;;  %s1244_s1 = inlined_call_operand.hbm [shape: bf16[96,128], index: 1, kind: input, shape index: {}]   ;;  %s1245_s2 = inlined_call_operand.vmem [shape: f32[1,128], index: 2, kind: input, shape index: {}]   ;;  %s1246_s3 = inlined_call_operand.hbm [shape: bf16[128,128], index: 3, kind: input, shape index: {}]   ;;  %s1247_s4 = inlined_call_operand.vmem [shape: f32[1,128], index: 4, kind: input, shape index: {}]   ;;  %s1248_s5 = inlined_call_operand.hbm [shape: f32[25,128], index: 5, kind: output, shape index: {}]  }
   0x1   :  { %12 = vsyncpa [#allocation3 + $0x1], 0 }
   0x2   :  { %13 = vsyncpa [#allocation6], 0 }
   0x3   :  { %14 = vsyncpa [#allocation4], 0 }
   0x4   :  { %16 = vsyncpa [#allocation4 + $0x1], 0  ;;  %s995_s18 = smov 0   ;;  %s997_s19 = smov 0  }
   0x5   :  { %s999_s20 = smov 0   ;;  %s1001_s21 = smov 0  }
   0x6 LB: > { %s1016_s22 = sadd.s32 4294967295, %s951_s21   ;;  %s613_s23 = sadd.s32 4294967294, %s951_s21   ;;  %s951_s21 = sphi %s1001_s21, %s1268_s21   ;;  %s947_s20 = sphi %s999_s20, %s1267_s20   ;;  %s943_s19 = sphi %s997_s19, %s1266_s19   ;;  %s939_s18 = sphi %s995_s18, %s1265_s18  }
   0x7   : > { %p42_p0 = scmp.ne.s32.totalorder %s943_s19, %s939_s18  ;;  %p1249_p1 = scmp.eq.s32.totalorder %s1016_s22, 0 }
   0x8   : > { %p156_p3 = scmp.eq.s32.totalorder %s613_s23, 1  ;;  %p614_p5 = scmp.ge.s32.totalorder %s951_s21, 1 }
   0x9   : > { %p1025_p4 = por %p1249_p1, %p42_p0  ;;  %p163_p7 = scmp.lt.s32.totalorder %s951_s21, 3 }
   0xa   : > { %p1030_p6 = por %p156_p3, %p42_p0  ;;  %s953_s27 = smov [#allocation5]  }
   0xb   : > { %s1252_s24 = scalar_select %p1025_p4, 1, 0 }
   0xc   : > { %s1253_s25 = scalar_select %p1030_p6, 1, 0 }
   0xd   : > { %p1035_p8 = pnand %p614_p5, %p163_p7  ;;  %s175_s28 = sshll.u32 %s953_s27, 4  ;;  %s1039_s28 = int_to_ptr.vmem [resolvable:$true] %s175_s28 }
   0xe   : > { %s954_s30 = smov [#allocation7]   ;;  %s795_s9 = scalar_lea.hbm %s1244_s1, 768 }
   0xf   : > { %p714_p9 = pneg %p1035_p8  ;;  %s191_s6 = sshll.u32 %s954_s30, 4  ;;  %s1050_s6 = int_to_ptr.vmem [resolvable:$true] %s191_s6 }
  0x10   : > { %p796_p12 = scmp.ne.s32.totalorder %s1244_s1, %s795_s9  ;;  %p802_p5 = scmp.lt.u32.totalorder %s795_s9, %s1244_s1 }
  0x11   : > { %p1046_p11 = pnand %p714_p9, %p1249_p1 }
  0x13   : > { %p797_p13 = pneg %p1046_p11 }
  0x15   : > { %p798_p0 = pnand %p797_p13, %p796_p12 }
  0x17   : > { %p799_p3 = pneg %p798_p0 }
  0x19   : > { %p804_p7 = pnand %p802_p5, %p799_p3 }
  0x1b   : > { %807 = shalt.err (!%p804_p7)
}
  0x1c   : > { %s808_s14 = scalar_lea.vmem %s1039_s28, 768  ;;  %p816_p2 = scmp.lt.s32.totalorder %s1039_s28, %s1039_s28 }
  0x1d   : > { %p809_p9 = scmp.ne.s32.totalorder %s1039_s28, %s808_s14  ;;  %p817_p12 = scmp.lt.s32.totalorder %s808_s14, %s808_s14 }
  0x1f   : > { %p811_p10 = pnand %p809_p9, %p797_p13  ;;  %p818_p0 = por %p817_p12, %p816_p2 }
  0x21   : > { %p812_p1 = pneg %p811_p10 }
  0x23   : > { %p819_p6 = pnand %p818_p0, %p812_p1 }
  0x25   : > { %822 = shalt.err (!%p819_p6)
}
  0x26   : > { %s955_s15 = smov 64   ;;  %s956_s16 = smov 4  }
  0x27   : > { %717 = dma.hbm_to_vmem [thread:$0]  (!%p1046_p11), %s1244_s1, 768, %s1039_s28, [#allocation6], %s955_s15, %s955_s15, %s956_s16  }
  0x28   : > { %s823_s7 = scalar_lea.hbm %s1246_s3, 1024 }
  0x29   : > { %p824_p2 = scmp.ne.s32.totalorder %s1246_s3, %s823_s7  ;;  %p830_p10 = scmp.lt.u32.totalorder %s823_s7, %s1246_s3 }
  0x2b   : > { %p826_p1 = pnand %p824_p2, %p797_p13 }
  0x2d   : > { %p827_p6 = pneg %p826_p1 }
  0x2f   : > { %p832_p3 = pnand %p830_p10, %p827_p6 }
  0x31   : > { %835 = shalt.err (!%p832_p3)
}
  0x32   : > { %s836_s28 = scalar_lea.vmem %s1050_s6, 1024  ;;  %p844_p12 = scmp.lt.s32.totalorder %s1050_s6, %s1050_s6 }
  0x33   : > { %p837_p5 = scmp.ne.s32.totalorder %s1050_s6, %s836_s28  ;;  %p845_p0 = scmp.lt.s32.totalorder %s836_s28, %s836_s28 }
  0x35   : > { %p839_p7 = pnand %p837_p5, %p797_p13  ;;  %p846_p2 = por %p845_p0, %p844_p12 }
  0x37   : > { %p840_p9 = pneg %p839_p7 }
  0x39   : > { %p847_p1 = pnand %p846_p2, %p840_p9 }
  0x3b   : > { %850 = shalt.err (!%p847_p1)
}
  0x3c   : > { %720 = dma.hbm_to_vmem [thread:$0]  (!%p1046_p11), %s1246_s3, 1024, %s1050_s6, [#allocation6], %s955_s15, %s955_s15, %s956_s16  }
  0x3d   : > { %s1105_s14 = sadd.s32 1, %s951_s21   ;;  %s29_s29 = sadd.s32 1, %s947_s20 }
  0x3e   : > { %s26_s17 = ssub.s32 %s951_s21, %s1105_s14  ;;  %p36_p13 = scmp.ne.s32.totalorder %s947_s20, %s943_s19 }
  0x3f   : > { %p27_p6 = scmp.eq.s32.totalorder %s26_s17, 0  ;;  %p37_p10 = scmp.eq.s32.totalorder %s951_s21, 0 }
  0x40   : > { %p1256_p3 = scmp.eq.s32.totalorder %s1016_s22, 1  ;;  %p731_p7 = scmp.lt.s32.totalorder %s951_s21, 2 }
  0x41   : > { %s1121_s27 = scalar_select %p27_p6, %s947_s20, %s29_s29  }
  0x42   : > { %p1115_p5 = por %p1256_p3, %p36_p13  ;;  %p38_p9 = por %p37_p10, %p36_p13 }
  0x43   : > { %s208_s30 = sand.u32 1, %s947_s20   ;;  %s648_s6 = sshll.u32 %s951_s21, 8 }
  0x44   : > { %s1257_s23 = scalar_select %p1115_p5, 1, 0 }
  0x45   : > { %s618_s7 = sshll.u32 %s208_s30, 4  ;;  %s1128_s8 = scalar_lea.hbm %s1243_s0, %s648_s6 }
  0x46   : > { %s212_s9 = scalar_lea.vmem [#allocation2], %s618_s7  ;;  %p1132_p11 = pnand %p731_p7, %p38_p9 }
  0x47   : > { %s219_s10 = sshll.u32 %s212_s9, 4  ;;  %s1136_s28 = scalar_lea.sflag [#allocation3], %s208_s30  ;;  %s1130_s10 = int_to_ptr.vmem [resolvable:$true] %s219_s10 }
  0x48   : > { %s851_s12 = scalar_lea.hbm %s1128_s8, 256  ;;  %p853_p0 = pneg %p1132_p11 }
  0x49   : > { %p852_p12 = scmp.ne.s32.totalorder %s1128_s8, %s851_s12  ;;  %s856_s17 = scalar_lea.hbm %s1243_s0, 512 }
  0x4a   : > { %p857_p13 = scmp.lt.u32.totalorder %s1128_s8, %s1243_s0  ;;  %p858_p6 = scmp.lt.u32.totalorder %s856_s17, %s851_s12 }
  0x4b   : > { %p854_p2 = pnand %p853_p0, %p852_p12  ;;  %p860_p3 = scmp.lt.u32.totalorder %s851_s12, %s1128_s8 }
  0x4c   : > { %p859_p10 = por %p858_p6, %p857_p13 }
  0x4d   : > { %p855_p1 = pneg %p854_p2 }
  0x4e   : > { %p861_p7 = por %p860_p3, %p859_p10 }
  0x50   : > { %p862_p9 = pnand %p861_p7, %p855_p1 }
  0x52   : > { %865 = shalt.err (!%p862_p9)
}
  0x53   : > { %s866_s30 = scalar_lea.vmem %s1130_s10, 256  ;;  %s957_s15 = smov [#allocation2]  }
  0x54   : > { %p867_p12 = scmp.ne.s32.totalorder %s1130_s10, %s866_s30  ;;  %s871_s16 = sshll.u32 %s957_s15, 4  ;;  %s872_s16 = int_to_ptr.vmem [resolvable:$false] %s871_s16 }
  0x55   : > { %s873_s9 = scalar_lea.vmem %s872_s16, 512  ;;  %p874_p4 = scmp.lt.s32.totalorder %s1130_s10, %s872_s16 }
  0x56   : > { %p869_p2 = pnand %p867_p12, %p853_p0  ;;  %p875_p13 = scmp.lt.s32.totalorder %s873_s9, %s866_s30 }
  0x58   : > { %p870_p5 = pneg %p869_p2  ;;  %p876_p6 = por %p875_p13, %p874_p4 }
  0x5a   : > { %p877_p10 = pnand %p876_p6, %p870_p5 }
  0x5c   : > { %880 = shalt.err (!%p877_p10)
}
  0x5d   : > { %s958_s12 = smov 128   ;;  %s959_s13 = smov 8  }
  0x5e   : > { %724 = dma.hbm_to_vmem [thread:$0]  (!%p1132_p11), %s1128_s8, 256, %s1130_s10, %s1136_s28, %s958_s12, %s958_s12, %s959_s13  }
  0x5f   : > { %231 = sbr.rel (%p1035_p8) target bundleno = 744 (0x2e8), region = 40  ;;  %s1167_s29 = sand.u32 (!%p1035_p8), 1, %s943_s19  }
  0x60   : > { %s622_s17 = sshll.u32 (!%p1035_p8), %s1167_s29, 4  ;;  %s234_s7 = scalar_lea.sflag (!%p1035_p8), [#allocation3], %s1167_s29 }
  0x61   : > { %s1173_s6 = scalar_lea.vmem (!%p1035_p8), [#allocation2], %s622_s17  ;;  %p1259_p4 = scmp.ne.s32.totalorder (!%p1035_p8), %s1252_s24, 0 }
  0x66   : > { %926 = dma.done.wait (%p1259_p4), %s234_s7, 256  }
  0x67   : > { %928 = vsyncadd (%p1259_p4), %s234_s7, 4294967040  ;;  %p1260_p5 = scmp.eq.s32.totalorder %s1016_s22, 0 }
  0x69   : > { %930 = dma.done.wait (%p1260_p5), [#allocation6], 1792   ;;  %p1261_p8 = pmov %p1260_p5 }
  0x6a   : > { %v960_v0 = vmov 0.0   ;;  %vm961_vm0 = vmmov 0   ;;  %v777_v1 = vld [vmem:[#allocation5] sm:$0xff]   ;;  %v778_v2 = vld [vmem:[#allocation5 + $0x8] sm:$0xff]   ;;  %v779_v3 = vld [vmem:[#allocation5 + $0x10] sm:$0xff]   ;;  %vm333_vm1 = vcmask 785408  }
  0x6b   : > { %932 = vsyncadd (%p1261_p8), [#allocation6], 4294965504  ;;  %666 = vmatprep.subr.bf16.mxu0 %v960_v0  ;;  %678 = vmatprep.mubr.msk.bf16.mxu0 %vm961_vm0, %v960_v0  ;;  %v783_v4 = vld [vmem:[#allocation7] sm:$0xff]   ;;  %v784_v5 = vld [vmem:[#allocation7 + $0x8] sm:$0xff]   ;;  %s649_s11 = sshll.u32 %s1016_s22, 8  ;;  %s271_s28 = scalar_lea.vmem [#allocation8], %s622_s17 }
  0x6c   : > { %682 = vmatprep.subr.bf16.mxu1 %v960_v0  ;;  %698 = vmatprep.mubr.msk.bf16.mxu1 %vm961_vm0, %v960_v0  ;;  %v780_v6 = vld [vmem:[#allocation5 + $0x18] sm:$0xff]   ;;  %v785_v7 = vld [vmem:[#allocation7 + $0x10] sm:$0xff]   ;;  %v786_v9 = vld [vmem:[#allocation7 + $0x18] sm:$0xff]   ;;  %s521_s30 = sshll.u32 %s271_s28, 4  ;;  %s1197_s9 = scalar_lea.hbm %s1248_s5, %s649_s11  ;;  %s1199_s30 = int_to_ptr.vmem [resolvable:$true] %s521_s30 }
  0x6d   : > { %667 = vmatpush3.bf16.msra.mxu0 %v777_v1  ;;  %683 = vmatpush3.bf16.msra.mxu1 %v783_v4  ;;  %v781_v8 = vld [vmem:[#allocation5 + $0x20] sm:$0xff]   ;;  %v782_v10 = vld [vmem:[#allocation5 + $0x28] sm:$0xff]   ;;  %v787_v14 = vld [vmem:[#allocation7 + $0x20] sm:$0xff]   ;;  %s508_s12 = scalar_lea.sflag [#allocation4], %s1167_s29  ;;  %s881_s13 = scalar_lea.vmem %s1199_s30, 256 }
  0x6e   : > { %668 = vmatprep.subr.bf16.mxu0 %v960_v0  ;;  %684 = vmatprep.subr.bf16.mxu1 %v960_v0  ;;  %v275_v11 = vld [vmem:[%s1173_s6] sm:$0xff]  ;;  %v276_v12 = vld [vmem:[%s1173_s6 + $0x8] sm:$0xff]  ;;  %p882_p11 = scmp.ne.s32.totalorder %s1199_s30, %s881_s13  ;;  %p1262_p0 = scmp.ne.s32.totalorder %s1257_s23, 0 }
  0x6f   : > { %v277_v13 = vpack.c.bf16 %v276_v12, %v275_v11  ;;  %v788_v15 = vld [vmem:[#allocation7 + $0x28] sm:$0xff]   ;;  %v789_v16 = vld [vmem:[#allocation7 + $0x30] sm:$0xff]   ;;  %v790_v17 = vld [vmem:[#allocation7 + $0x38] sm:$0xff]   ;;  %s962_s22 = smov [#allocation8]  }
  0x70   : > { %v626_v18 = vld [vmem:[%s1245_s2] ss:$0 sm:$0xff]  ;;  %p883_p1 = pnand %p882_p11, %p1262_p0  ;;  %s885_s17 = sshll.u32 %s962_s22, 4  ;;  %s886_s17 = int_to_ptr.vmem [resolvable:$false] %s885_s17 }
  0x71   : > { %669 = vmatpush3.bf16.msra.mxu0 %v778_v2  ;;  %685 = vmatpush3.bf16.msra.mxu1 %v784_v5  ;;  %v634_v28 = vld [vmem:[%s1247_s4] ss:$0 sm:$0xff]  ;;  %s887_s7 = scalar_lea.vmem %s886_s17, 512  ;;  %p888_p7 = scmp.lt.s32.totalorder %s1199_s30, %s886_s17 }
  0x72   : > { %670 = vmatprep.subr.bf16.mxu0 %v960_v0  ;;  %686 = vmatprep.subr.bf16.mxu1 %v960_v0  ;;  %p884_p3 = pneg %p883_p1  ;;  %p889_p9 = scmp.lt.s32.totalorder %s887_s7, %s881_s13 }
  0x74   : > { %p890_p12 = por %p889_p9, %p888_p7 }
  0x75   : > { %671 = vmatpush3.bf16.msra.mxu0 %v779_v3  ;;  %687 = vmatpush3.bf16.msra.mxu1 %v785_v7 }
  0x76   : > { %672 = vmatprep.subr.bf16.mxu0 %v960_v0  ;;  %688 = vmatprep.subr.bf16.mxu1 %v960_v0  ;;  %p891_p2 = pnand %p890_p12, %p884_p3 }
  0x79   : > { %673 = vmatpush3.bf16.msra.mxu0 %v780_v6  ;;  %689 = vmatpush3.bf16.msra.mxu1 %v786_v9 }
  0x7a   : > { %674 = vmatprep.subr.bf16.mxu0 %v960_v0  ;;  %690 = vmatprep.subr.bf16.mxu1 %v960_v0 }
  0x7d   : > { %675 = vmatpush3.bf16.msra.mxu0 %v781_v8  ;;  %691 = vmatpush3.bf16.msra.mxu1 %v787_v14 }
  0x7e   : > { %676 = vmatprep.subr.bf16.mxu0 %v960_v0  ;;  %692 = vmatprep.subr.bf16.mxu1 %v960_v0 }
  0x81   : > { %677 = vmatpush3.bf16.msra.mxu0 %v782_v10  ;;  %693 = vmatpush3.bf16.msra.mxu1 %v788_v15 }
  0x82   : > { %694 = vmatprep.subr.bf16.mxu1 %v960_v0 }
  0x84   : > { %679 = vmatmul.mubr.msk.bf16.vlgmr.msra.gmra.mrb[0].mxu0 %vm333_vm1, %v277_v13 }
  0x85   : > { %695 = vmatpush3.bf16.msra.mxu1 %v789_v16 }
  0x86   : > { %696 = vmatprep.subr.bf16.mxu1 %v960_v0 }
  0x89   : > { %697 = vmatpush3.bf16.msra.mxu1 %v790_v17 }
 0x157   : > { %v371_v19 = vpop.f32.mrb[0].mxu0 }
 0x158   : > { %v372_v20 = vadd.f32 %v626_v18, %v371_v19  ;;  %v680_v21 = vpop.f32.mrb[1].mxu0 }
 0x159   : > { %v374_v22 = vpop.f32.mrb[2].mxu0 }
 0x15a   : > { %v375_v23 = vadd.f32 %v626_v18, %v374_v22  ;;  %v681_v24 = vpop.f32.mrb[3].mxu0  ;;  %v378_v25 = vmax.f32 %v372_v20, 0.0 }
 0x15c   : > { %v379_v26 = vmax.f32 %v375_v23, 0.0 }
 0x15e   : > { %v380_v27 = vpack.c.bf16 %v379_v26, %v378_v25 }
 0x160   : > { %699 = vmatmul.mubr.bf16.vlgmr.msra.gmra.mrb[0].mxu1 %v380_v27 }
 0x233   : > { %v486_v29 = vpop.f32.mrb[0].mxu1 }
 0x234   : > { %v487_v30 = vadd.f32 %v634_v28, %v486_v29  ;;  %v700_v31 = vpop.f32.mrb[1].mxu1 }
 0x235   : > { %v489_v32 = vpop.f32.mrb[2].mxu1 }
 0x236   : > { %v490_v33 = vadd.f32 %v634_v28, %v489_v32  ;;  %v701_v34 = vpop.f32.mrb[3].mxu1  ;;  %v493_v35 = vmul.f32 %v487_v30, %v487_v30 }
 0x238   : > { %495 = vadd.xlane.f32.xlu0 %v493_v35  ;;  %v494_v36 = vmul.f32 %v490_v33, %v490_v33 }
 0x23c   : > { %497 = vadd.xlane.f32.xlu0 %v494_v36 }
 0x2c5   : > { %v496_v37 = vpop.xlane.xlu0 %495 }
 0x2c6   : > { %v499_v38 = vmax.f32 %v496_v37, 1e-24 }
 0x2c8   : > { %791 = vrsqrt.f32 %v499_v38 }
 0x2c9   : > { %v498_v39 = vpop.xlane.xlu0 %497 }
 0x2ca   : > { %v500_v40 = vmax.f32 %v498_v39, 1e-24 }
 0x2cc   : > { %793 = vrsqrt.f32 %v500_v40 }
 0x2d2   : > { %v792_v41 = vpop.eup %791 }
 0x2d3   : > { %v503_v42 = vmul.f32 %v792_v41, %v487_v30 }
 0x2d5   : > { %505 = vst [vmem:[%s271_s28] sm:$0xff] %v503_v42 }
 0x2d6   : > { %v794_v43 = vpop.eup %793 }
 0x2d7   : > { %v504_v44 = vmul.f32 %v794_v43, %v490_v33 }
 0x2d9   : > { %506 = vst [vmem:[%s271_s28 + $0x8] sm:$0xff] %v504_v44 }
 0x2da   : > { %894 = shalt.err (!%p891_p2)
}
 0x2db   : > { %s895_s6 = scalar_lea.hbm %s1197_s9, 256  ;;  %s899_s8 = scalar_lea.hbm %s1248_s5, 512 }
 0x2dc   : > { %p896_p13 = scmp.ne.s32.totalorder %s1197_s9, %s895_s6  ;;  %p900_p4 = scmp.lt.u32.totalorder %s1197_s9, %s1248_s5 }
 0x2dd   : > { %p901_p5 = scmp.lt.u32.totalorder %s899_s8, %s895_s6  ;;  %p903_p11 = scmp.lt.u32.totalorder %s895_s6, %s1197_s9 }
 0x2de   : > { %p897_p6 = pnand %p896_p13, %p1262_p0 }
 0x2df   : > { %p902_p8 = por %p901_p5, %p900_p4 }
 0x2e0   : > { %p898_p10 = pneg %p897_p6 }
 0x2e1   : > { %p904_p1 = por %p903_p11, %p902_p8 }
 0x2e3   : > { %p905_p3 = pnand %p904_p1, %p898_p10 }
 0x2e5   : > { %908 = shalt.err (!%p905_p3)
}
 0x2e6   : > { %s963_s28 = smov 128   ;;  %s964_s15 = smov 8  }
 0x2e7   : > { %712 = dma.vmem_to_hbm [thread:$0]  (%p1262_p0), %s1199_s30, 256, %s1197_s9, %s508_s12, %s963_s28, %s963_s28, %s964_s15  }
 0x2e8 PF: > { %s536_s16 = sand.u32 1, %s939_s18   ;;  %p1263_p7 = scmp.ne.s32.totalorder %s1253_s25, 0 }
 0x2e9   : > { %p1264_p9 = scmp.ge.s32.totalorder %s951_s21, 2  ;;  %s537_s13 = scalar_lea.sflag [#allocation4], %s536_s16 }
 0x2eb   : > { %p726_p12 = pnand %p1264_p9, %p1263_p7 }
 0x2ed   : > { %934 = dma.done.wait (!%p726_p12), %s537_s13, 256  }
 0x2ee   : > { %936 = vsyncadd (!%p726_p12), %s537_s13, 4294967040  ;;  %p19_p2 = scmp.ge.s32.totalorder %s1105_s14, 4   ;;  %s1265_s18 = smov %s943_s19 }
 0x2ef   : > { %s1266_s19 = smov %s947_s20  ;;  %s1267_s20 = smov %s1121_s27 }
 0x2f0   : > { %s1268_s21 = smov %s1105_s14  ;;  %21 = sbr.rel (!%p19_p2) target bundleno = 6 (0x6), region = 93 }
 0x2f7   :  { %542 = vsyncpa [#allocation3], 1 }
 0x2f8   :  { %544 = vsyncpa [#allocation3 + $0x1], 1 }
 0x2f9   :  { %545 = vsyncpa [#allocation6], 1 }
 0x2fa   :  { %546 = vsyncpa [#allocation4], 1 }
 0x2fb   :  { %548 = vsyncpa [#allocation4 + $0x1], 1 }

</bundles_post_ra>
